<compile_context>
chip_gen: v7x
topology: tpu7x:2x2x1
jax: 0.10.0
libtpu: 0.0.40
codegen_flags: <defaults>
</compile_context>

<pallas_src>
import functools

import jax
import jax.numpy as jnp
from jax.experimental import pallas as pl
from jax.experimental.pallas import tpu as pltpu


def _round_up(x, m):
    return (x + m - 1) // m * m


def _cdiv(a, b):
    return (a + b - 1) // b


def _probe_pipeline_mode():
    """Detect BlockSpec(pipeline_mode=pl.Buffered(1)) support (single-buffered
    resident weights).  Falls back to default double-buffering when absent."""
    try:
        pl.BlockSpec((8, 128), lambda i: (0, 0), pipeline_mode=pl.Buffered(1))
        return True
    except Exception:
        return False


_HAS_PIPELINE_MODE = _probe_pipeline_mode()


# ----------------------------- Pallas kernel --------------------------------
def fused_head_kernel(img_ref, txt_ref, mask_ref, imgproj_ref, w1_ref, b1_ref,
                      w2_ref, b2_ref, out_ref, acc_ref):
    """K-tiled image-projection accumulation, then (at the last K step):
       tanh -> (folded) concat -> Linear -> ReLU -> Dropout (identity, eval)
       -> Linear with lane-padded logits."""
    k = pl.program_id(1)

    @pl.when(k == 0)
    def _():
        acc_ref[...] = jnp.zeros_like(acc_ref)

    # The f32 image block is cast to bf16 on the VPU right before the MXU push;
    # the raw image is read from HBM exactly once (no wrapper cast pass).
    acc_ref[...] += jnp.dot(img_ref[...].astype(jnp.bfloat16), imgproj_ref[...],
                            preferred_element_type=jnp.float32)

    @pl.when(k == pl.num_programs(1) - 1)
    def _():
        # Stand-in CLIP projection nonlinearity (EUP slot, overlaps MXU work).
        img_half = jnp.tanh(acc_ref[...])
        # Concat folded into an add: imgproj columns [clip_dim:] are zero (so
        # tanh is exactly 0 there) and txt lanes [:clip_dim] are zero, hence
        #   img_half + txt == concat([image_features, text_features], -1).
        txt = txt_ref[...] * mask_ref[...]            # CLS mask-mul in-kernel
        combined = (img_half + txt).astype(jnp.bfloat16)
        h = jnp.dot(combined, w1_ref[...], preferred_element_type=jnp.float32)
        h = jnp.maximum(h + b1_ref[...], 0.0)         # bias + ReLU in f32
        # TODO(synk): nn.Dropout is identity in eval/inference mode (no-op here).
        logits = jnp.dot(h.astype(jnp.bfloat16), w2_ref[...],
                         preferred_element_type=jnp.float32)
        out_ref[...] = logits + b2_ref[...]           # dense 128-wide store


# ----------------------- one-time parameter preparation ----------------------
def prepare_kernel_params(params, num_labels):
    """Hoisted out of the per-call path: bf16 casts, lane padding of the output
    layer, and zero-padded layouts that fold the concat into a plain add."""
    img_proj = params["img_proj"]            # (kin, clip_dim) f32
    embed = params["embed_table"]            # (vocab, text_dim) f32
    w1, b1 = params["w1"], params["b1"]      # (clip+text, hidden), (hidden,)
    w2, b2 = params["w2"], params["b2"]      # (hidden, num_labels), (num_labels,)

    kin, clip_dim = img_proj.shape
    vocab, text_dim = embed.shape
    comb, hidden = w1.shape
    assert comb == clip_dim + text_dim
    lpad = _round_up(num_labels, 128)        # lane-dense logits
    kin_pad = _round_up(kin, 128)            # K-tiling friendly

    # Image projection padded on N: text half is zero -> tanh stays exactly 0.
    # TODO(synk): at very large kin the zero columns double img_proj HBM traffic;
    # switch to a clip_dim-wide weight + in-kernel lane concat if that dominates.
    img_proj_pad = (jnp.zeros((kin_pad, comb), jnp.float32)
                    .at[:kin, :clip_dim].set(img_proj))
    # Embedding table pre-shifted into lanes [clip_dim:], image half zero.
    embed_pad = jnp.zeros((vocab, comb), jnp.float32).at[:, clip_dim:].set(embed)
    # Second Linear lane-padded to a multiple of 128 (extra logits are zero and
    # get sliced off in the wrapper).
    w2_pad = jnp.zeros((hidden, lpad), jnp.float32).at[:, :num_labels].set(w2)
    b2_pad = jnp.zeros((1, lpad), jnp.float32).at[:, :num_labels].set(b2)

    return {
        "kin": kin, "kin_pad": kin_pad, "clip_dim": clip_dim,
        "text_dim": text_dim, "comb": comb, "hidden": hidden,
        "num_labels": num_labels, "lpad": lpad,
        "img_proj": img_proj_pad.astype(jnp.bfloat16),
        "embed_table": embed_pad,                         # gathered in f32
        "w1": w1.astype(jnp.bfloat16),
        "b1": b1.reshape(1, hidden).astype(jnp.float32),
        "w2": w2_pad.astype(jnp.bfloat16),
        "b2": b2_pad,
    }


# ------------------------------ tiling heuristics ----------------------------
def _choose_batch_tiling(B, tile_b_req):
    """Large batch tiles amortize the ~0.35 us/grid-step overhead; an even
    number of batch tiles keeps both v7x TensorCores fed via ("parallel", ...)."""
    b_min = _round_up(B, 8)                              # sublane packing
    tile_b = max(8, min(_round_up(tile_b_req, 8), b_min))
    n_tiles = _cdiv(b_min, tile_b)
    if b_min >= 16:
        n_tiles = _round_up(max(n_tiles, 2), 2)          # >= 2 and even
        tile_b = _round_up(_cdiv(b_min, n_tiles), 8)
    pad_b = tile_b * _cdiv(b_min, tile_b)
    return tile_b, pad_b


# --------------------------------- forward ----------------------------------
def multimodal_classifier_forward(image, input_ids, attention_mask, kp,
                                  *, tile_b=512, tk_max=2048):
    """Forward pass matching MultiModalClassifier.forward (eval mode)."""
    B = image.shape[0]
    kin, kin_pad = kp["kin"], kp["kin_pad"]
    comb, hidden, lpad = kp["comb"], kp["hidden"], kp["lpad"]

    # TODO(synk): pretrained CLIP vision tower / text transformer have no
    # Pallas translation; deterministic stand-ins reproduce only the feature
    # shapes.  The image stand-in's projection matmul IS fused into the kernel;
    # the text CLS feature is a direct embedding-table gather (no (B,S,D)).
    img_flat = image.reshape(B, -1)                      # free reshape, stays f32
    assert img_flat.shape[1] == kin
    cls_emb = jnp.take(kp["embed_table"], input_ids[:, 0], axis=0)   # (B, comb) f32
    mask0 = attention_mask[:, 0:1].astype(jnp.float32)               # (B, 1)   f32

    # --- batch tiling (big tiles, even count for the v7x megacore split) -----
    tile_b, pad_b = _choose_batch_tiling(B, tile_b)
    grid_b = pad_b // tile_b

    # --- K tiling over the flattened-image dim -------------------------------
    # Bounds per-step VMEM for realistic kin (e.g. 3*224*224 = 150528) so the
    # projection weight never has to be VMEM-resident in one piece.
    tk = min(_round_up(tk_max, 128), kin_pad)
    while kin_pad % tk:            # keep tk a multiple of 128 dividing kin_pad
        tk -= 128
    n_k = kin_pad // tk

    # Pad the batch only when needed (pick B a multiple of 8 in production to
    # skip this copy); pad kin only when it is not already a 128 multiple.
    if pad_b != B:
        img_flat = jnp.pad(img_flat, ((0, pad_b - B), (0, 0)))
        cls_emb = jnp.pad(cls_emb, ((0, pad_b - B), (0, 0)))
        mask0 = jnp.pad(mask0, ((0, pad_b - B), (0, 0)))
    if kin_pad != kin:
        img_flat = jnp.pad(img_flat, ((0, 0), (0, kin_pad - kin)))

    def tiled(d):                  # streamed per batch tile
        return pl.BlockSpec((tile_b, d), lambda i, k: (i, 0))

    def resident(r, c):            # VMEM-resident across the whole grid
        if _HAS_PIPELINE_MODE:     # 2nd buffer for constant-index weights is dead VMEM
            return pl.BlockSpec((r, c), lambda i, k: (0, 0),
                                pipeline_mode=pl.Buffered(1))
        return pl.BlockSpec((r, c), lambda i, k: (0, 0))

    # VMEM budget: double-buffered streamed tiles + single-buffered weights.
    need = (2 * tile_b * tk * 4                      # image K blocks (f32)
            + 2 * tk * comb * 2                      # img_proj K blocks (bf16)
            + 2 * (tile_b * comb * 4 + tile_b * 4)   # txt + mask tiles (f32)
            + 2 * tile_b * lpad * 4                  # logits out tile (f32)
            + (comb * hidden + hidden * lpad) * 2    # resident bf16 weights
            + (hidden + lpad) * 4                    # resident f32 biases
            + tile_b * comb * 4)                     # accumulator scratch
    vmem_limit = int(min(max(2 * need, 32 << 20), 48 << 20))  # <= 48 MiB (v7x safe)

    out = pl.pallas_call(
        fused_head_kernel,
        out_shape=jax.ShapeDtypeStruct((pad_b, lpad), jnp.float32),
        grid_spec=pltpu.PrefetchScalarGridSpec(
            num_scalar_prefetch=0,
            grid=(grid_b, n_k),
            in_specs=[
                pl.BlockSpec((tile_b, tk), lambda i, k: (i, k)),  # raw image (f32)
                tiled(comb),             # CLS embedding, lane-shifted (f32)
                tiled(1),                # CLS attention mask          (f32)
                pl.BlockSpec((tk, comb), lambda i, k: (k, 0)),    # img_proj (bf16)
                resident(comb, hidden),  # w1                          (bf16)
                resident(1, hidden),     # b1                          (f32)
                resident(hidden, lpad),  # w2, lane-padded             (bf16)
                resident(1, lpad),       # b2, lane-padded             (f32)
            ],
            out_specs=pl.BlockSpec((tile_b, lpad), lambda i, k: (i, 0)),
            scratch_shapes=[pltpu.VMEM((tile_b, comb), jnp.float32)],
        ),
        compiler_params=pltpu.CompilerParams(
            dimension_semantics=("parallel", "arbitrary"),
            vmem_limit_bytes=vmem_limit,
        ),
    )(img_flat, cls_emb, mask0, kp["img_proj"], kp["w1"], kp["b1"],
      kp["w2"], kp["b2"])

    return out[:B, :kp["num_labels"]]


# ------------------------------ pure-JAX reference ---------------------------
def reference_forward(image, input_ids, attention_mask, params):
    """f32 reference of the stand-in forward (concat -> linear -> relu -> linear)."""
    B = image.shape[0]
    img_feat = jnp.tanh(image.reshape(B, -1) @ params["img_proj"])
    emb = params["embed_table"][input_ids]
    last_hidden = emb * attention_mask[..., None].astype(emb.dtype)
    txt_feat = last_hidden[:, 0, :]
    combined = jnp.concatenate([img_feat, txt_feat], axis=-1)
    h = jnp.maximum(combined @ params["w1"] + params["b1"], 0.0)
    return h @ params["w2"] + params["b2"]


# ----------------------------------- main ------------------------------------
if __name__ == "__main__":
    # Small, forward-consistent shapes.
    B, C, HW = 2, 3, 16           # image: (B, 3, 16, 16), NCHW
    S = 8                         # sequence length
    clip_dim = 64                 # stands in for CLIP projection_dim (768)
    text_dim = 64                 # stands in for text hidden_size (768/1024)
    hidden_dim = 128              # nn.Linear hidden (512 in the module)
    num_labels = 8
    vocab = 100

    key = jax.random.PRNGKey(0)
    keys = jax.random.split(key, 8)

    params = {
        "img_proj": 0.02 * jax.random.normal(keys[0], (C * HW * HW, clip_dim),
                                             jnp.float32),
        "embed_table": 0.02 * jax.random.normal(keys[1], (vocab, text_dim),
                                                jnp.float32),
        "w1": 0.02 * jax.random.normal(keys[2], (clip_dim + text_dim, hidden_dim),
                                       jnp.float32),
        "b1": 0.01 * jax.random.normal(keys[3], (hidden_dim,), jnp.float32),
        "w2": 0.02 * jax.random.normal(keys[4], (hidden_dim, num_labels),
                                       jnp.float32),
        "b2": 0.01 * jax.random.normal(keys[5], (num_labels,), jnp.float32),
    }

    image = jax.random.normal(keys[6], (B, C, HW, HW), jnp.float32)
    input_ids = jax.random.randint(keys[7], (B, S), 0, vocab, jnp.int32)
    attention_mask = jnp.ones((B, S), jnp.int32)

    # Parameter prep happens ONCE (bf16 casts, padding, concat folding layout).
    kp = prepare_kernel_params(params, num_labels)
    fwd = jax.jit(functools.partial(multimodal_classifier_forward, kp=kp))

    logits = fwd(image, input_ids, attention_mask)
    jax.block_until_ready(logits)

    ref = reference_forward(image, input_ids, attention_mask, params)
    assert logits.shape == (B, num_labels)
    assert jnp.allclose(logits, ref, atol=1e-2, rtol=1e-2), \
        float(jnp.max(jnp.abs(logits - ref)))
    print("KERNEL_OK")
</pallas_src>

<mosaic_0001>
module attributes {stable_mosaic.version = 11 : i64} {
  func.func @fused_head_kernel(%arg0: i32, %arg1: i32, %arg2: memref<8x768xf32, #tpu.memory_space<vmem>>, %arg3: memref<8x128xf32, #tpu.memory_space<vmem>>, %arg4: memref<8x1xf32, #tpu.memory_space<vmem>>, %arg5: memref<768x128xbf16, #tpu.memory_space<vmem>>, %arg6: memref<128x128xbf16, #tpu.memory_space<vmem>>, %arg7: memref<1x128xf32, #tpu.memory_space<vmem>>, %arg8: memref<128x128xbf16, #tpu.memory_space<vmem>>, %arg9: memref<1x128xf32, #tpu.memory_space<vmem>>, %arg10: memref<8x128xf32, #tpu.memory_space<vmem>>, %arg11: memref<8x128xf32, #tpu.memory_space<vmem>>) attributes {dimension_semantics = [#tpu.dimension_semantics<parallel>, #tpu.dimension_semantics<arbitrary>], iteration_bounds = array<i64: 1, 1>, scalar_prefetch = 0 : i64, scratch_operands = 1 : i64, tpu.core_type = #tpu.core_type<tc>, window_params = [{transform_indices = @transform_0, window_bounds = array<i64: 8, 768>}, {transform_indices = @transform_1, window_bounds = array<i64: 8, 128>}, {transform_indices = @transform_2, window_bounds = array<i64: 8, 1>}, {transform_indices = @transform_3, window_bounds = array<i64: 768, 128>}, {pipeline_mode = #tpu.pipeline_mode<synchronous>, transform_indices = @transform_4, window_bounds = array<i64: 128, 128>}, {pipeline_mode = #tpu.pipeline_mode<synchronous>, transform_indices = @transform_5, window_bounds = array<i64: 1, 128>}, {pipeline_mode = #tpu.pipeline_mode<synchronous>, transform_indices = @transform_6, window_bounds = array<i64: 128, 128>}, {pipeline_mode = #tpu.pipeline_mode<synchronous>, transform_indices = @transform_7, window_bounds = array<i64: 1, 128>}, {transform_indices = @transform_8, window_bounds = array<i64: 8, 128>}]} {
    %c0_i32 = arith.constant 0 : i32
    %0 = arith.cmpi eq, %arg1, %c0_i32 : i32
    %1 = arith.extui %0 : i1 to i32
    %c0_i32_0 = arith.constant 0 : i32
    %2 = arith.cmpi ne, %1, %c0_i32_0 : i32
    scf.if %2 {
      %cst_10 = arith.constant 0.000000e+00 : f32
      %13 = vector.broadcast %cst_10 : f32 to vector<8x128xf32>
      %c0_11 = arith.constant 0 : index
      %c0_12 = arith.constant 0 : index
      %14 = vector.load %arg11[%c0_11, %c0_12] : memref<8x128xf32, #tpu.memory_space<vmem>>, vector<8x128xf32>
      tpu.vector_store %arg11[%c0_11, %c0_12], %13 {strides = array<i32>} : memref<8x128xf32, #tpu.memory_space<vmem>>, vector<8x128xf32>,
    } else {
    }
    %c0 = arith.constant 0 : index
    %c0_1 = arith.constant 0 : index
    %3 = vector.load %arg11[%c0, %c0_1] : memref<8x128xf32, #tpu.memory_space<vmem>>, vector<8x128xf32>
    %c0_2 = arith.constant 0 : index
    %c0_3 = arith.constant 0 : index
    %4 = vector.load %arg2[%c0_2, %c0_3] : memref<8x768xf32, #tpu.memory_space<vmem>>, vector<8x768xf32>
    %5 = arith.truncf %4 : vector<8x768xf32> to vector<8x768xbf16>
    %c0_4 = arith.constant 0 : index
    %c0_5 = arith.constant 0 : index
    %6 = vector.load %arg5[%c0_4, %c0_5] : memref<768x128xbf16, #tpu.memory_space<vmem>>, vector<768x128xbf16>
    %cst = arith.constant dense<0.000000e+00> : vector<8x128xf32>
    %7 = tpu.matmul %5, %6, %cst {dimension_numbers = #tpu.dot_dimension_numbers<[1], [0], [0], [1], [0, 0, 1, 1], [], []>} : vector<8x768xbf16>, vector<768x128xbf16>, vector<8x128xf32> -> vector<8x128xf32>
    %8 = arith.addf %3, %7 : vector<8x128xf32>
    %c0_6 = arith.constant 0 : index
    %c0_7 = arith.constant 0 : index
    %9 = vector.load %arg11[%c0_6, %c0_7] : memref<8x128xf32, #tpu.memory_space<vmem>>, vector<8x128xf32>
    tpu.vector_store %arg11[%c0_6, %c0_7], %8 {strides = array<i32>} : memref<8x128xf32, #tpu.memory_space<vmem>>, vector<8x128xf32>,
    %c0_i32_8 = arith.constant 0 : i32
    %10 = arith.cmpi eq, %arg1, %c0_i32_8 : i32
    %11 = arith.extui %10 : i1 to i32
    %c0_i32_9 = arith.constant 0 : i32
    %12 = arith.cmpi ne, %11, %c0_i32_9 : i32
    scf.if %12 {
      %c0_10 = arith.constant 0 : index
      %c0_11 = arith.constant 0 : index
      %13 = vector.load %arg11[%c0_10, %c0_11] : memref<8x128xf32, #tpu.memory_space<vmem>>, vector<8x128xf32>
      %14 = math.tanh %13 : vector<8x128xf32>
      %c0_12 = arith.constant 0 : index
      %c0_13 = arith.constant 0 : index
      %15 = vector.load %arg3[%c0_12, %c0_13] : memref<8x128xf32, #tpu.memory_space<vmem>>, vector<8x128xf32>
      %c0_14 = arith.constant 0 : index
      %c0_15 = arith.constant 0 : index
      %16 = vector.load %arg4[%c0_14, %c0_15] : memref<8x1xf32, #tpu.memory_space<vmem>>, vector<8x1xf32>
      %17 = vector.broadcast %16 : vector<8x1xf32> to vector<8x128xf32>
      %18 = arith.mulf %15, %17 : vector<8x128xf32>
      %19 = arith.addf %14, %18 : vector<8x128xf32>
      %20 = arith.truncf %19 : vector<8x128xf32> to vector<8x128xbf16>
      %c0_16 = arith.constant 0 : index
      %c0_17 = arith.constant 0 : index
      %21 = vector.load %arg6[%c0_16, %c0_17] : memref<128x128xbf16, #tpu.memory_space<vmem>>, vector<128x128xbf16>
      %cst_18 = arith.constant dense<0.000000e+00> : vector<8x128xf32>
      %22 = tpu.matmul %20, %21, %cst_18 {dimension_numbers = #tpu.dot_dimension_numbers<[1], [0], [0], [1], [0, 0, 1, 1], [], []>} : vector<8x128xbf16>, vector<128x128xbf16>, vector<8x128xf32> -> vector<8x128xf32>
      %c0_19 = arith.constant 0 : index
      %c0_20 = arith.constant 0 : index
      %23 = vector.load %arg7[%c0_19, %c0_20] : memref<1x128xf32, #tpu.memory_space<vmem>>, vector<1x128xf32>
      %24 = vector.broadcast %23 : vector<1x128xf32> to vector<8x128xf32>
      %25 = arith.addf %22, %24 : vector<8x128xf32>
      %cst_21 = arith.constant 0.000000e+00 : f32
      %26 = vector.broadcast %cst_21 : f32 to vector<8x128xf32>
      %27 = arith.maximumf %25, %26 : vector<8x128xf32>
      %28 = arith.truncf %27 : vector<8x128xf32> to vector<8x128xbf16>
      %c0_22 = arith.constant 0 : index
      %c0_23 = arith.constant 0 : index
      %29 = vector.load %arg8[%c0_22, %c0_23] : memref<128x128xbf16, #tpu.memory_space<vmem>>, vector<128x128xbf16>
      %cst_24 = arith.constant dense<0.000000e+00> : vector<8x128xf32>
      %30 = tpu.matmul %28, %29, %cst_24 {dimension_numbers = #tpu.dot_dimension_numbers<[1], [0], [0], [1], [0, 0, 1, 1], [], []>} : vector<8x128xbf16>, vector<128x128xbf16>, vector<8x128xf32> -> vector<8x128xf32>
      %c0_25 = arith.constant 0 : index
      %c0_26 = arith.constant 0 : index
      %31 = vector.load %arg9[%c0_25, %c0_26] : memref<1x128xf32, #tpu.memory_space<vmem>>, vector<1x128xf32>
      %32 = vector.broadcast %31 : vector<1x128xf32> to vector<8x128xf32>
      %33 = arith.addf %30, %32 : vector<8x128xf32>
      %c0_27 = arith.constant 0 : index
      %c0_28 = arith.constant 0 : index
      %34 = vector.load %arg10[%c0_27, %c0_28] : memref<8x128xf32, #tpu.memory_space<vmem>>, vector<8x128xf32>
      tpu.vector_store %arg10[%c0_27, %c0_28], %33 {strides = array<i32>} : memref<8x128xf32, #tpu.memory_space<vmem>>, vector<8x128xf32>,
    } else {
    }
    return
  }
  func.func @transform_0(%arg0: i32, %arg1: i32) -> (i32, i32) {
    %c0_i32 = arith.constant 0 : i32
    return %arg0, %arg1 : i32, i32
  }
  func.func @transform_1(%arg0: i32, %arg1: i32) -> (i32, i32) {
    %c0_i32 = arith.constant 0 : i32
    %c0_i32_0 = arith.constant 0 : i32
    return %arg0, %c0_i32 : i32, i32
  }
  func.func @transform_2(%arg0: i32, %arg1: i32) -> (i32, i32) {
    %c0_i32 = arith.constant 0 : i32
    %c0_i32_0 = arith.constant 0 : i32
    return %arg0, %c0_i32 : i32, i32
  }
  func.func @transform_3(%arg0: i32, %arg1: i32) -> (i32, i32) {
    %c0_i32 = arith.constant 0 : i32
    %c0_i32_0 = arith.constant 0 : i32
    return %arg1, %c0_i32 : i32, i32
  }
  func.func @transform_4(%arg0: i32, %arg1: i32) -> (i32, i32) {
    %c0_i32 = arith.constant 0 : i32
    %c0_i32_0 = arith.constant 0 : i32
    %c0_i32_1 = arith.constant 0 : i32
    return %c0_i32, %c0_i32_0 : i32, i32
  }
  func.func @transform_5(%arg0: i32, %arg1: i32) -> (i32, i32) {
    %c0_i32 = arith.constant 0 : i32
    %c0_i32_0 = arith.constant 0 : i32
    %c0_i32_1 = arith.constant 0 : i32
    return %c0_i32, %c0_i32_0 : i32, i32
  }
  func.func @transform_6(%arg0: i32, %arg1: i32) -> (i32, i32) {
    %c0_i32 = arith.constant 0 : i32
    %c0_i32_0 = arith.constant 0 : i32
    %c0_i32_1 = arith.constant 0 : i32
    return %c0_i32, %c0_i32_0 : i32, i32
  }
  func.func @transform_7(%arg0: i32, %arg1: i32) -> (i32, i32) {
    %c0_i32 = arith.constant 0 : i32
    %c0_i32_0 = arith.constant 0 : i32
    %c0_i32_1 = arith.constant 0 : i32
    return %c0_i32, %c0_i32_0 : i32, i32
  }
  func.func @transform_8(%arg0: i32, %arg1: i32) -> (i32, i32) {
    %c0_i32 = arith.constant 0 : i32
    %c0_i32_0 = arith.constant 0 : i32
    return %arg0, %c0_i32 : i32, i32
  }
}

</mosaic_0001>

<bundles_post_ra>
// kernel: multimodal_classifier_forward.1
= control target key start
LH: loop header
LB: loop body
LE: loop exit
PB: predicated region body
PF: predicated region fallthrough
CT: control target
= control target key end

     0   :  { %13 = vsyncpa [#allocation4], 0  ;;  %s1100_s27 = smov [#allocation3]   ;;  %s1262_s0 = inlined_call_operand.vmem [shape: f32[8,768], index: 0, kind: input, shape index: {}]   ;;  %s1263_s1 = inlined_call_operand.vmem [shape: f32[8,128], index: 1, kind: input, shape index: {}]   ;;  %s1264_s2 = inlined_call_operand.vmem [shape: f32[8,1], index: 2, kind: input, shape index: {}]   ;;  %s1265_s3 = inlined_call_operand.hbm [shape: bf16[768,128], index: 3, kind: input, shape index: {}]   ;;  %s1266_s4 = inlined_call_operand.vmem [shape: bf16[128,128], index: 4, kind: input, shape index: {}]   ;;  %s1267_s5 = inlined_call_operand.vmem [shape: f32[1,128], index: 5, kind: input, shape index: {}]   ;;  %s1268_s6 = inlined_call_operand.vmem [shape: bf16[128,128], index: 6, kind: input, shape index: {}]   ;;  %s1269_s7 = inlined_call_operand.vmem [shape: f32[1,128], index: 7, kind: input, shape index: {}]   ;;  %s1270_s8 = inlined_call_operand.vmem [shape: f32[8,128], index: 8, kind: output, shape index: {}]  }
   0x1   :  { %s25_s28 = sshll.u32 %s1100_s27, 4  ;;  %s1076_s9 = scalar_lea.hbm %s1265_s3, 6144  ;;  %s26_s28 = int_to_ptr.vmem [resolvable:$true] %s25_s28 }
   0x2   :  { %p1077_p0 = scmp.ne.s32.totalorder %s1265_s3, %s1076_s9  ;;  %p1080_p1 = scmp.lt.u32.totalorder %s1076_s9, %s1265_s3 }
   0x4   :  { %p1082_p2 = pnand %p1080_p1, %p1077_p0 }
   0x6   :  { %1085 = shalt.err (!%p1082_p2)
}
   0x7   :  { %s1086_s14 = scalar_lea.vmem %s26_s28, 6144  ;;  %p1091_p4 = scmp.lt.s32.totalorder %s26_s28, %s26_s28 }
   0x8   :  { %p1087_p3 = scmp.ne.s32.totalorder %s26_s28, %s1086_s14  ;;  %p1092_p5 = scmp.lt.s32.totalorder %s1086_s14, %s1086_s14 }
   0xa   :  { %p1093_p6 = por %p1092_p5, %p1091_p4 }
   0xc   :  { %p1094_p7 = pnand %p1093_p6, %p1087_p3 }
   0xe   :  { %1097 = shalt.err (!%p1094_p7)
}
   0xf   :  { %s1101_s15 = smov 64   ;;  %s1102_s16 = smov 4  }
  0x10   :  { %31 = dma.hbm_to_vmem [thread:$0]  %s1265_s3, 6144, %s26_s28, [#allocation4], %s1101_s15, %s1101_s15, %s1102_s16  }
  0x11   :  { %1098 = dma.done.wait [#allocation4], 6144  }
  0x12   :  { %1099 = vsyncadd [#allocation4], 4294961152  ;;  %v1103_v0 = vmov 0   ;;  %v1010_v1 = vld [vmem:[#allocation3 + $0x40] sm:$0xff]   ;;  %v1014_v5 = vld [vmem:[#allocation3 + $0x48] sm:$0xff]   ;;  %v1104_v63 = vmov 0.0  }
  0x13   :  { %1009 = vset.pattern.permute.xlu0 %v1103_v0  ;;  %v1011_v2 = vld [vmem:[#allocation3 + $0xc0] sm:$0xff]   ;;  %879 = vmatprep.subr.bf16.mxu0 %v1010_v1  ;;  %v1015_v6 = vld [vmem:[#allocation3 + $0xc8] sm:$0xff]   ;;  %v1018_v9 = vld [vmem:[#allocation3 + $0x50] sm:$0xff]   ;;  %vm1105_vm0 = vmmov 0  }
  0x14   :  { %v1012_v3 = vld [vmem:[#allocation3] sm:$0xff]   ;;  %901 = vmatprep.subr.bf16.mxu1 %v1011_v2  ;;  %v1016_v7 = vld [vmem:[#allocation3 + $0x8] sm:$0xff]   ;;  %v1019_v10 = vld [vmem:[#allocation3 + $0xd0] sm:$0xff]  }
  0x15   :  { %v1013_v4 = vld [vmem:[#allocation3 + $0x80] sm:$0xff]   ;;  %880 = vmatpush3.bf16.msra.mxu0 %v1012_v3  ;;  %v1017_v8 = vld [vmem:[#allocation3 + $0x88] sm:$0xff]   ;;  %v1020_v11 = vld [vmem:[#allocation3 + $0x10] sm:$0xff]  }
  0x16   :  { %902 = vmatpush3.bf16.msra.mxu1 %v1013_v4  ;;  %881 = vmatprep.subr.bf16.mxu0 %v1014_v5  ;;  %v1021_v12 = vld [vmem:[#allocation3 + $0x90] sm:$0xff]   ;;  %v1022_v13 = vld [vmem:[#allocation3 + $0x58] sm:$0xff]   ;;  %v1026_v17 = vld [vmem:[#allocation3 + $0x60] sm:$0xff]  }
  0x17   :  { %903 = vmatprep.subr.bf16.mxu1 %v1015_v6  ;;  %v1023_v14 = vld [vmem:[#allocation3 + $0xd8] sm:$0xff]   ;;  %v1027_v18 = vld [vmem:[#allocation3 + $0xe0] sm:$0xff]   ;;  %v1030_v21 = vld [vmem:[#allocation3 + $0x68] sm:$0xff]  }
  0x18   :  { %v1024_v15 = vld [vmem:[#allocation3 + $0x18] sm:$0xff]   ;;  %v1028_v19 = vld [vmem:[#allocation3 + $0x20] sm:$0xff]   ;;  %v1031_v22 = vld [vmem:[#allocation3 + $0xe8] sm:$0xff]  }
  0x19   :  { %882 = vmatpush3.bf16.msra.mxu0 %v1016_v7  ;;  %v1025_v16 = vld [vmem:[#allocation3 + $0x98] sm:$0xff]   ;;  %v1029_v20 = vld [vmem:[#allocation3 + $0xa0] sm:$0xff]   ;;  %v1032_v23 = vld [vmem:[#allocation3 + $0x28] sm:$0xff]  }
  0x1a   :  { %904 = vmatpush3.bf16.msra.mxu1 %v1017_v8  ;;  %883 = vmatprep.subr.bf16.mxu0 %v1018_v9  ;;  %v1033_v24 = vld [vmem:[#allocation3 + $0xa8] sm:$0xff]   ;;  %v1034_v25 = vld [vmem:[#allocation3 + $0x70] sm:$0xff]   ;;  %v1038_v29 = vld [vmem:[#allocation3 + $0x78] sm:$0xff]  }
  0x1b   :  { %905 = vmatprep.subr.bf16.mxu1 %v1019_v10  ;;  %v1035_v26 = vld [vmem:[#allocation3 + $0xf0] sm:$0xff]   ;;  %v1039_v30 = vld [vmem:[#allocation3 + $0xf8] sm:$0xff]   ;;  %v51_v33 = vld [vmem:[%s1262_s0 + $0x8] sm:$0xff] }
  0x1c   :  { %v1036_v27 = vld [vmem:[#allocation3 + $0x30] sm:$0xff]   ;;  %v1040_v31 = vld [vmem:[#allocation3 + $0x38] sm:$0xff]   ;;  %v50_v35 = vld [vmem:[%s1262_s0] sm:$0xff]  ;;  %v57_v36 = vpack.c.bf16 %v51_v33, %v51_v33 }
  0x1d   :  { %884 = vmatpush3.bf16.msra.mxu0 %v1020_v11  ;;  %v1037_v28 = vld [vmem:[#allocation3 + $0xb0] sm:$0xff]   ;;  %v1041_v32 = vld [vmem:[#allocation3 + $0xb8] sm:$0xff]   ;;  %v56_v38 = vpack.c.bf16 %v50_v35, %v50_v35  ;;  %v1042_v41 = vld [vmem:[#allocation3 + $0x140] sm:$0xff]  }
  0x1e   :  { %906 = vmatpush3.bf16.msra.mxu1 %v1021_v12  ;;  %885 = vmatprep.subr.bf16.mxu0 %v1022_v13  ;;  %v53_v34 = vld [vmem:[%s1262_s0 + $0x18] sm:$0xff]  ;;  %v52_v39 = vld [vmem:[%s1262_s0 + $0x10] sm:$0xff]  ;;  %v1043_v42 = vld [vmem:[#allocation3 + $0x100] sm:$0xff]  }
  0x1f   :  { %907 = vmatprep.subr.bf16.mxu1 %v1023_v14  ;;  %v59_v37 = vpack.c.bf16 %v53_v34, %v53_v34  ;;  %v58_v40 = vpack.c.bf16 %v52_v39, %v52_v39  ;;  %478 = vmatprep.mubr.bf16.mxu0 %v57_v36  ;;  %v1044_v43 = vld [vmem:[#allocation3 + $0x148] sm:$0xff]   ;;  %v1046_v45 = vld [vmem:[#allocation3 + $0x150] sm:$0xff]   ;;  %v1048_v47 = vld [vmem:[#allocation3 + $0x158] sm:$0xff]  }
  0x20   :  { %v1045_v44 = vld [vmem:[#allocation3 + $0x108] sm:$0xff]   ;;  %v1047_v46 = vld [vmem:[#allocation3 + $0x110] sm:$0xff]   ;;  %v1049_v48 = vld [vmem:[#allocation3 + $0x118] sm:$0xff]  }
  0x21   :  { %886 = vmatpush3.bf16.msra.mxu0 %v1024_v15  ;;  %518 = vmatprep.mubr.bf16.mxu1 %v59_v37  ;;  %v1050_v49 = vld [vmem:[#allocation3 + $0x160] sm:$0xff]   ;;  %v1052_v51 = vld [vmem:[#allocation3 + $0x168] sm:$0xff]   ;;  %v1054_v56 = vld [vmem:[#allocation3 + $0x170] sm:$0xff]  }
  0x22   :  { %908 = vmatpush3.bf16.msra.mxu1 %v1025_v16  ;;  %887 = vmatprep.subr.bf16.mxu0 %v1026_v17  ;;  %v1051_v50 = vld [vmem:[#allocation3 + $0x120] sm:$0xff]   ;;  %v55_v52 = vld [vmem:[%s1262_s0 + $0x28] sm:$0xff]  ;;  %v1055_v57 = vld [vmem:[#allocation3 + $0x130] sm:$0xff]  }
  0x23   :  { %909 = vmatprep.subr.bf16.mxu1 %v1027_v18  ;;  %v61_v53 = vpack.c.bf16 %v55_v52, %v55_v52  ;;  %v574_v54 = vld [vmem:[%s1264_s2] sm:$0xff]  ;;  %v1053_v55 = vld [vmem:[#allocation3 + $0x128] sm:$0xff]   ;;  %v1056_v58 = vld [vmem:[#allocation3 + $0x178] sm:$0xff]  }
  0x24   :  { %577 = vperm.xlu0 %1009, %v574_v54   ;;  %v1057_v59 = vld [vmem:[#allocation3 + $0x138] sm:$0xff]   ;;  %v54_v60 = vld [vmem:[%s1262_s0 + $0x20] sm:$0xff]  ;;  %v1059_v0 = vld [vmem:[%s1266_s4 + $0x8] sm:$0xff]  }
  0x25   :  { %888 = vmatpush3.bf16.msra.mxu0 %v1028_v19  ;;  %v60_v61 = vpack.c.bf16 %v54_v60, %v54_v60  ;;  %v1058_v62 = vld [vmem:[%s1266_s4] sm:$0xff]   ;;  %v1060_v1 = vld [vmem:[%s1266_s4 + $0x10] sm:$0xff]   ;;  %v1061_v2 = vld [vmem:[%s1266_s4 + $0x18] sm:$0xff]  }
  0x26   :  { %910 = vmatpush3.bf16.msra.mxu1 %v1029_v20  ;;  %889 = vmatprep.subr.bf16.mxu0 %v1030_v21  ;;  %v1062_v3 = vld [vmem:[%s1266_s4 + $0x20] sm:$0xff]   ;;  %v1063_v4 = vld [vmem:[%s1266_s4 + $0x28] sm:$0xff]   ;;  %v1064_v5 = vld [vmem:[%s1266_s4 + $0x30] sm:$0xff]  }
  0x27   :  { %911 = vmatprep.subr.bf16.mxu1 %v1031_v22  ;;  %v1065_v6 = vld [vmem:[%s1266_s4 + $0x38] sm:$0xff]   ;;  %v1066_v7 = vld [vmem:[%s1268_s6] sm:$0xff]   ;;  %v1067_v8 = vld [vmem:[%s1268_s6 + $0x8] sm:$0xff]  }
  0x28   :  { %v1068_v9 = vld [vmem:[%s1268_s6 + $0x10] sm:$0xff]   ;;  %v1069_v10 = vld [vmem:[%s1268_s6 + $0x18] sm:$0xff]   ;;  %v1070_v11 = vld [vmem:[%s1268_s6 + $0x20] sm:$0xff]  }
  0x29   :  { %890 = vmatpush3.bf16.msra.mxu0 %v1032_v23  ;;  %v1071_v12 = vld [vmem:[%s1268_s6 + $0x28] sm:$0xff]   ;;  %v1072_v36 = vld [vmem:[%s1268_s6 + $0x30] sm:$0xff]   ;;  %v1073_v37 = vld [vmem:[%s1268_s6 + $0x38] sm:$0xff]  }
  0x2a   :  { %912 = vmatpush3.bf16.msra.mxu1 %v1033_v24  ;;  %891 = vmatprep.subr.bf16.mxu0 %v1034_v25 }
  0x2b   :  { %913 = vmatprep.subr.bf16.mxu1 %v1035_v26 }
  0x2d   :  { %892 = vmatpush3.bf16.msra.mxu0 %v1036_v27 }
  0x2e   :  { %914 = vmatpush3.bf16.msra.mxu1 %v1037_v28  ;;  %893 = vmatprep.subr.bf16.mxu0 %v1038_v29 }
  0x2f   :  { %915 = vmatprep.subr.bf16.mxu1 %v1039_v30 }
  0x31   :  { %894 = vmatpush3.bf16.msra.mxu0 %v1040_v31  ;;  %v573_v31 = vld [vmem:[%s1263_s1] sm:$0xff] }
  0x32   :  { %916 = vmatpush3.bf16.msra.mxu1 %v1041_v32  ;;  %923 = vmatprep.subr.bf16.mxu0 %v1042_v41 }
  0x33   :  { %963 = vmatprep.subr.bf16.mxu1 %v1104_v63 }
  0x34   :  { %479 = vmatmul.mubr.bf16.vlgmr.msra.gmra.mrb[0].mxu0 %v56_v38  ;;  %v861_v38 = vld [vmem:[%s1267_s5] ss:$0 sm:$0xff] }
  0x35   :  { %519 = vmatmul.mubr.bf16.vlgmr.msra.gmra.mrb[0].mxu1 %v58_v40  ;;  %924 = vmatpush3.bf16.msra.mxu0 %v1043_v42 }
  0x36   :  { %925 = vmatprep.subr.bf16.mxu0 %v1044_v43  ;;  %558 = vmatprep.mubr.bf16.mxu0 %v61_v53 }
  0x37   :  { %964 = vmatpush3.bf16.msra.mxu1 %v1058_v62  ;;  %979 = vmatprep.mubr.msk.bf16.mxu1 %vm1105_vm0, %v1104_v63 }
  0x38   :  { %965 = vmatprep.subr.bf16.mxu1 %v1104_v63 }
  0x39   :  { %926 = vmatpush3.bf16.msra.mxu0 %v1045_v44 }
  0x3a   :  { %927 = vmatprep.subr.bf16.mxu0 %v1046_v45 }
  0x3b   :  { %966 = vmatpush3.bf16.msra.mxu1 %v1059_v0 }
  0x3c   :  { %967 = vmatprep.subr.bf16.mxu1 %v1104_v63 }
  0x3d   :  { %928 = vmatpush3.bf16.msra.mxu0 %v1047_v46  ;;  %v870_v46 = vld [vmem:[%s1269_s7] ss:$0 sm:$0xff] }
  0x3e   :  { %929 = vmatprep.subr.bf16.mxu0 %v1048_v47 }
  0x3f   :  { %968 = vmatpush3.bf16.msra.mxu1 %v1060_v1 }
  0x40   :  { %969 = vmatprep.subr.bf16.mxu1 %v1104_v63 }
  0x41   :  { %930 = vmatpush3.bf16.msra.mxu0 %v1049_v48 }
  0x42   :  { %931 = vmatprep.subr.bf16.mxu0 %v1050_v49 }
  0x43   :  { %970 = vmatpush3.bf16.msra.mxu1 %v1061_v2 }
  0x44   :  { %971 = vmatprep.subr.bf16.mxu1 %v1104_v63 }
  0x45   :  { %932 = vmatpush3.bf16.msra.mxu0 %v1051_v50 }
  0x46   :  { %933 = vmatprep.subr.bf16.mxu0 %v1052_v51 }
  0x47   :  { %972 = vmatpush3.bf16.msra.mxu1 %v1062_v3 }
  0x48   :  { %973 = vmatprep.subr.bf16.mxu1 %v1104_v63 }
  0x49   :  { %934 = vmatpush3.bf16.msra.mxu0 %v1053_v55 }
  0x4a   :  { %935 = vmatprep.subr.bf16.mxu0 %v1054_v56 }
  0x4b   :  { %974 = vmatpush3.bf16.msra.mxu1 %v1063_v4 }
  0x4c   :  { %975 = vmatprep.subr.bf16.mxu1 %v1104_v63 }
  0x4d   :  { %936 = vmatpush3.bf16.msra.mxu0 %v1055_v57 }
  0x4e   :  { %937 = vmatprep.subr.bf16.mxu0 %v1056_v58 }
  0x4f   :  { %976 = vmatpush3.bf16.msra.mxu1 %v1064_v5 }
  0x50   :  { %977 = vmatprep.subr.bf16.mxu1 %v1104_v63 }
  0x51   :  { %938 = vmatpush3.bf16.msra.mxu0 %v1057_v59 }
  0x52   :  { %983 = vmatprep.subr.bf16.mxu0 %v1104_v63 }
  0x53   :  { %978 = vmatpush3.bf16.msra.mxu1 %v1065_v6 }
  0x54   :  { %559 = vmatmul.mubr.bf16.vlgmr.msra.gmra.mrb[4].mxu0 %v60_v61 }
  0x55   :  { %999 = vmatprep.mubr.msk.bf16.mxu0 %vm1105_vm0, %v1104_v63  ;;  %984 = vmatpush3.bf16.msra.mxu0 %v1066_v7 }
  0x56   :  { %985 = vmatprep.subr.bf16.mxu0 %v1104_v63 }
  0x59   :  { %986 = vmatpush3.bf16.msra.mxu0 %v1067_v8 }
  0x5a   :  { %987 = vmatprep.subr.bf16.mxu0 %v1104_v63 }
  0x5d   :  { %988 = vmatpush3.bf16.msra.mxu0 %v1068_v9 }
  0x5e   :  { %989 = vmatprep.subr.bf16.mxu0 %v1104_v63 }
  0x61   :  { %990 = vmatpush3.bf16.msra.mxu0 %v1069_v10 }
  0x62   :  { %991 = vmatprep.subr.bf16.mxu0 %v1104_v63 }
  0x65   :  { %992 = vmatpush3.bf16.msra.mxu0 %v1070_v11 }
  0x66   :  { %993 = vmatprep.subr.bf16.mxu0 %v1104_v63 }
  0x69   :  { %994 = vmatpush3.bf16.msra.mxu0 %v1071_v12 }
  0x6a   :  { %995 = vmatprep.subr.bf16.mxu0 %v1104_v63 }
  0x6d   :  { %996 = vmatpush3.bf16.msra.mxu0 %v1072_v36 }
  0x6e   :  { %997 = vmatprep.subr.bf16.mxu0 %v1104_v63 }
  0x71   :  { %998 = vmatpush3.bf16.msra.mxu0 %v1073_v37 }
  0xa3   :  { %v578_v30 = vpop.permute.xlu0 %577 }
  0xa4   :  { %v580_v32 = vmul.f32 %v578_v30, %v573_v31 }
 0x107   :  { %v895_v13 = vpop.f32.mrb[0].mxu0 }
 0x108   :  { %v917_v14 = vpop.f32.mrb[0].mxu1  ;;  %v896_v15 = vpop.f32.mrb[1].mxu0 }
 0x109   :  { %v918_v16 = vpop.f32.mrb[1].mxu1  ;;  %v897_v17 = vadd.f32 %v896_v15, %v895_v13  ;;  %v898_v19 = vpop.f32.mrb[2].mxu0 }
 0x10a   :  { %v919_v18 = vadd.f32 %v918_v16, %v917_v14  ;;  %v920_v20 = vpop.f32.mrb[2].mxu1  ;;  %v899_v21 = vpop.f32.mrb[3].mxu0 }
 0x10b   :  { %v921_v22 = vpop.f32.mrb[3].mxu1 }
 0x10c   :  { %v521_v23 = vadd.f32 %v919_v18, %v897_v17 }
 0x127   :  { %v939_v24 = vpop.f32.mrb[4].mxu0 }
 0x128   :  { %v940_v25 = vpop.f32.mrb[5].mxu0 }
 0x129   :  { %v941_v26 = vadd.f32 %v940_v25, %v939_v24  ;;  %v942_v27 = vpop.f32.mrb[6].mxu0 }
 0x12a   :  { %v943_v28 = vpop.f32.mrb[7].mxu0 }
 0x12b   :  { %v561_v29 = vadd.f32 %v941_v26, %v521_v23 }
 0x12d   :  { %1074 = vtanh.f32 %v561_v29 }
 0x137   :  { %v1075_v33 = vpop.eup %1074 }
 0x138   :  { %v581_v34 = vadd.f32 %v1075_v33, %v580_v32 }
 0x13a   :  { %v582_v35 = vpack.c.bf16 %v581_v34, %v581_v34 }
 0x13c   :  { %980 = vmatmul.mubr.bf16.vlgmr.msra.gmra.mrb[4].mxu1 %v582_v35 }
 0x20f   :  { %v688_v39 = vpop.f32.mrb[4].mxu1 }
 0x210   :  { %v689_v40 = vadd.f32 %v861_v38, %v688_v39  ;;  %v981_v41 = vpop.f32.mrb[5].mxu1 }
 0x211   :  { %v691_v42 = vpop.f32.mrb[6].mxu1 }
 0x212   :  { %v694_v43 = vmax.f32 %v689_v40, 0.0  ;;  %v982_v44 = vpop.f32.mrb[7].mxu1 }
 0x214   :  { %v695_v45 = vpack.c.bf16 %v694_v43, %v694_v43 }
 0x216   :  { %1000 = vmatmul.mubr.bf16.vlgmr.msra.gmra.mrb[8].mxu0 %v695_v45 }
 0x2e9   :  { %v801_v47 = vpop.f32.mrb[8].mxu0 }
 0x2ea   :  { %v802_v48 = vadd.f32 %v870_v46, %v801_v47  ;;  %v1001_v49 = vpop.f32.mrb[9].mxu0 }
 0x2eb   :  { %v804_v50 = vpop.f32.mrb[10].mxu0 }
 0x2ec   :  { %807 = vst [vmem:[%s1270_s8] sm:$0xff] %v802_v48  ;;  %v1002_v51 = vpop.f32.mrb[11].mxu0 }
 0x2ed   :  { %812 = vsyncpa [#allocation4], 1 }

</bundles_post_ra>
